<compile_context>
chip_gen: v5e
topology: v5e:2x2
jax: 0.10.0
libtpu: 0.0.40
codegen_flags: <defaults>
</compile_context>

<pallas_src>
import jax
import jax.numpy as jnp
from jax import lax
from jax.experimental import pallas as pl
from jax.experimental.pallas import tpu as pltpu


def _critic_kernel(x_ref, w1_ref, b1_ref, w2_ref, b2_ref, o_ref):
    # ---- First linear (MXU), NT form: (H, K) x (B, K)^T -> (H, B). ----------
    # Keeping hidden on sublanes / batch on lanes means every later store and
    # reduction is lane-dense and no transpose is ever materialized.
    h = lax.dot_general(
        w1_ref[...],                       # (H, K)  native nn.Linear layout
        x_ref[...],                        # (B, K)
        dimension_numbers=(((1,), (1,)), ((), ())),
        preferred_element_type=jnp.float32,
    )                                      # (H, B) f32
    h = jnp.maximum(h + b1_ref[...], 0.0)  # bias (H, 1) lane-broadcast + ReLU (VPU)

    # ---- Second linear as VPU multiply + cross-sublane reduction (no MXU). --
    # w2 is a (H, 1) column: h * w2 on the VPU, sum over the hidden (sublane)
    # axis on the XLU, result already lane-dense as (1, B).
    v = jnp.sum(h * w2_ref[...], axis=0, keepdims=True)     # (1, B)
    o_ref[...] = (v + b2_ref[0]).astype(o_ref.dtype)         # scalar bias from SMEM


@jax.jit
def critic_forward(state, w1, b1, w2, b2):
    """state: (B, num_inputs) f32.
    Parameters follow PyTorch nn.Linear conventions:
      w1: (hidden, num_inputs), b1: (hidden,), w2: (1, hidden), b2: (1,).
    Returns value of shape (B, 1)."""
    B, _ = state.shape
    hidden = w1.shape[0]

    # Layout glue only (fused by jit, no extra HBM round-trips of weights):
    b1_col = b1.reshape(hidden, 1)   # per-hidden-row bias column
    w2_col = w2.reshape(hidden, 1)   # second-layer weights as a column
    b2_s = b2.reshape(1)             # scalar bias, lives in SMEM

    vmem = pl.BlockSpec(memory_space=pltpu.MemorySpace.VMEM)
    smem = pl.BlockSpec(memory_space=pltpu.MemorySpace.SMEM)

    values = pl.pallas_call(
        _critic_kernel,
        out_shape=jax.ShapeDtypeStruct((1, B), jnp.float32),  # lane-dense (batch on lanes)
        in_specs=[vmem, vmem, vmem, vmem, smem],
        out_specs=vmem,
    )(state, w1, b1_col, w2_col, b2_s)

    return values.reshape(B, 1)


def _ref_forward(state, w1, b1, w2, b2):
    h = jnp.maximum(state @ w1.T + b1, 0.0)
    return h @ w2.T + b2


if __name__ == "__main__":
    B = 8
    num_inputs = 32
    hidden_size = 256

    key = jax.random.PRNGKey(0)
    k_x, k_w1, k_b1, k_w2, k_b2 = jax.random.split(key, 5)

    # Deterministic synthetic parameters (PyTorch nn.Linear shapes/init bounds).
    bound1 = 1.0 / jnp.sqrt(num_inputs)
    bound2 = 1.0 / jnp.sqrt(hidden_size)
    w1 = jax.random.uniform(k_w1, (hidden_size, num_inputs), jnp.float32,
                            -bound1, bound1)
    b1 = jax.random.uniform(k_b1, (hidden_size,), jnp.float32, -bound1, bound1)
    w2 = jax.random.uniform(k_w2, (1, hidden_size), jnp.float32,
                            -bound2, bound2)
    b2 = jax.random.uniform(k_b2, (1,), jnp.float32, -bound2, bound2)

    state = jax.random.normal(k_x, (B, num_inputs), jnp.float32)

    value = critic_forward(state, w1, b1, w2, b2)
    value = jax.block_until_ready(value)

    ref = _ref_forward(state, w1, b1, w2, b2)
    assert value.shape == (B, 1)
    assert jnp.allclose(value, ref, atol=1e-4, rtol=1e-4)

    print("KERNEL_OK")
</pallas_src>

<mosaic_0001>
module attributes {stable_mosaic.version = 11 : i64} {
  func.func @_critic_kernel(%arg0: memref<8x32xf32, #tpu.memory_space<vmem>>, %arg1: memref<256x32xf32, #tpu.memory_space<vmem>>, %arg2: memref<256x1xf32, #tpu.memory_space<vmem>>, %arg3: memref<256x1xf32, #tpu.memory_space<vmem>>, %arg4: memref<1xf32, #tpu.memory_space<smem>>, %arg5: memref<1x8xf32, #tpu.memory_space<vmem>>) attributes {dimension_semantics = [], scalar_prefetch = 0 : i64, scratch_operands = 0 : i64, tpu.core_type = #tpu.core_type<tc>} {
    %c0 = arith.constant 0 : index
    %c0_0 = arith.constant 0 : index
    %0 = vector.load %arg1[%c0, %c0_0] : memref<256x32xf32, #tpu.memory_space<vmem>>, vector<256x32xf32>
    %c0_1 = arith.constant 0 : index
    %c0_2 = arith.constant 0 : index
    %1 = vector.load %arg0[%c0_1, %c0_2] : memref<8x32xf32, #tpu.memory_space<vmem>>, vector<8x32xf32>
    %cst = arith.constant dense<0.000000e+00> : vector<256x8xf32>
    %2 = tpu.matmul %0, %1, %cst {dimension_numbers = #tpu.dot_dimension_numbers<[1], [1], [0], [0], [0, 0, 1, 0], [], []>} : vector<256x32xf32>, vector<8x32xf32>, vector<256x8xf32> -> vector<256x8xf32>
    %c0_3 = arith.constant 0 : index
    %c0_4 = arith.constant 0 : index
    %3 = vector.load %arg2[%c0_3, %c0_4] : memref<256x1xf32, #tpu.memory_space<vmem>>, vector<256x1xf32>
    %4 = vector.broadcast %3 : vector<256x1xf32> to vector<256x8xf32>
    %5 = arith.addf %2, %4 : vector<256x8xf32>
    %cst_5 = arith.constant 0.000000e+00 : f32
    %6 = vector.broadcast %cst_5 : f32 to vector<256x8xf32>
    %7 = arith.maximumf %5, %6 : vector<256x8xf32>
    %c0_6 = arith.constant 0 : index
    %c0_7 = arith.constant 0 : index
    %8 = vector.load %arg3[%c0_6, %c0_7] : memref<256x1xf32, #tpu.memory_space<vmem>>, vector<256x1xf32>
    %9 = vector.broadcast %8 : vector<256x1xf32> to vector<256x8xf32>
    %10 = arith.mulf %7, %9 : vector<256x8xf32>
    %cst_8 = arith.constant dense<0.000000e+00> : vector<8xf32>
    %11 = vector.multi_reduction <add>, %10, %cst_8 [0] : vector<256x8xf32> to vector<8xf32>
    %12 = vector.shape_cast %11 : vector<8xf32> to vector<1x8xf32>
    %c0_9 = arith.constant 0 : index
    %13 = memref.load %arg4[%c0_9] : memref<1xf32, #tpu.memory_space<smem>>
    %14 = vector.broadcast %13 : f32 to vector<1x8xf32>
    %15 = arith.addf %12, %14 : vector<1x8xf32>
    %c0_10 = arith.constant 0 : index
    %c0_11 = arith.constant 0 : index
    %16 = vector.load %arg5[%c0_10, %c0_11] : memref<1x8xf32, #tpu.memory_space<vmem>>, vector<1x8xf32>
    tpu.vector_store %arg5[%c0_10, %c0_11], %15 {strides = array<i32>} : memref<1x8xf32, #tpu.memory_space<vmem>>, vector<1x8xf32>,
    return
  }
}

</mosaic_0001>

<bundles_post_ra>
// kernel: critic_forward.1
= control target key start
LH: loop header
LB: loop body
LE: loop exit
PB: predicated region body
PF: predicated region fallthrough
CT: control target
= control target key end

     0   :  { %vm247_vm0 = vcmask 261120   ;;  %v874_v1 = vmov 0   ;;  %s1409_s0 = inlined_call_operand.vmem [shape: f32[8,32], index: 0, kind: input, shape index: {}]   ;;  %s1410_s1 = inlined_call_operand.vmem [shape: f32[256,32], index: 1, kind: input, shape index: {}]   ;;  %s1411_s2 = inlined_call_operand.vmem [shape: f32[256,1], index: 2, kind: input, shape index: {}]   ;;  %s1412_s3 = inlined_call_operand.vmem [shape: f32[256,1], index: 3, kind: input, shape index: {}]   ;;  %s1413_s4 = inlined_call_operand.<no memory space> [shape: f32[1], index: 4, kind: input, shape index: {}]   ;;  %s1414_s5 = inlined_call_operand.hbm [shape: f32[1,8], index: 5, kind: output, shape index: {}]  }
   0x1   :  { %v54_v0 = vld [vmem:[%s1409_s0] sm:$0xff]  ;;  %847 = vset.pattern.permute.xlu2 %v874_v1  ;;  %846 = vset.pattern.permute.xlu1 %v874_v1  ;;  %v57_v3 = vld [vmem:[%s1411_s2 + $0x10] sm:$0xff]  ;;  %v60_v9 = vld [vmem:[%s1411_s2 + $0x28] sm:$0xff] }
   0x2   :  { %v59_v2 = vld [vmem:[%s1411_s2 + $0x20] sm:$0xff]  ;;  %845 = vset.pattern.permute.xlu0 %v874_v1  ;;  %807 = vmatpush.xpose.msk.msra.mxu0 %vm247_vm0, %v54_v0  ;;  %v58_v10 = vld [vmem:[%s1411_s2 + $0x18] sm:$0xff]  ;;  %v56_v11 = vld [vmem:[%s1411_s2 + $0x8] sm:$0xff] }
   0x3   :  { %v55_v4 = vld [vmem:[%s1411_s2] sm:$0xff]  ;;  %840 = vmatpush.xpose.msk.msra.mxu1 %vm247_vm0, %v54_v0  ;;  %841 = vmatpush.xpose.msk.msra.mxu2 %vm247_vm0, %v54_v0  ;;  %v23_v12 = vld [vmem:[%s1410_s1 + $0x8] sm:$0xff] }
   0x4   :  { %v22_v5 = vld [vmem:[%s1410_s1] sm:$0xff]  ;;  %842 = vmatpush.xpose.msk.msra.mxu3 %vm247_vm0, %v54_v0  ;;  %109 = vperm.xlu2 %847, %v59_v2   ;;  %v31_v13 = vld [vmem:[%s1410_s1 + $0x48] sm:$0xff] }
   0x5   :  { %v30_v6 = vld [vmem:[%s1410_s1 + $0x40] sm:$0xff]  ;;  %99 = vperm.xlu1 %846, %v57_v3   ;;  %89 = vperm.xlu0 %845, %v55_v4   ;;  %v39_v14 = vld [vmem:[%s1410_s1 + $0x88] sm:$0xff] }
   0x6   :  { %v38_v7 = vld [vmem:[%s1410_s1 + $0x80] sm:$0xff]  ;;  %808 = vmatmul.msk.f32.vlgmr.msra.gmra.mxu0 %vm247_vm0, %v22_v5  ;;  %816 = vmatmul.msk.f32.vlgmr.msra.gmra.mxu1 %vm247_vm0, %v30_v6  ;;  %v47_v15 = vld [vmem:[%s1410_s1 + $0xc8] sm:$0xff] }
   0x7   :  { %v46_v8 = vld [vmem:[%s1410_s1 + $0xc0] sm:$0xff]  ;;  %824 = vmatmul.msk.f32.vlgmr.msra.gmra.mxu2 %vm247_vm0, %v38_v7 }
   0x8   :  { %832 = vmatmul.msk.f32.vlgmr.msra.gmra.mxu3 %vm247_vm0, %v46_v8 }
   0xc   :  { %114 = vperm.xlu2 %847, %v60_v9  }
   0xd   :  { %104 = vperm.xlu1 %846, %v58_v10   ;;  %94 = vperm.xlu0 %845, %v56_v11  }
   0xe   :  { %11 = vsyncpa [#allocation4], 0  ;;  %809 = vmatmul.msk.f32.gmra.mxu0 %vm247_vm0, %v23_v12  ;;  %817 = vmatmul.msk.f32.gmra.mxu1 %vm247_vm0, %v31_v13  ;;  %v63_v16 = vld [vmem:[%s1411_s2 + $0x40] sm:$0xff]  ;;  %v62_v17 = vld [vmem:[%s1411_s2 + $0x38] sm:$0xff]  ;;  %vm716_vm1 = vcmask 64512   ;;  %s875_s25 = smov [#allocation3]  }
   0xf   :  { %825 = vmatmul.msk.f32.gmra.mxu2 %vm247_vm0, %v39_v14  ;;  %v61_v18 = vld [vmem:[%s1411_s2 + $0x30] sm:$0xff]  ;;  %v66_v23 = vld [vmem:[%s1411_s2 + $0x58] sm:$0xff]  ;;  %v64_v25 = vld [vmem:[%s1411_s2 + $0x48] sm:$0xff]  ;;  %s796_s0 = sshll.u32 %s875_s25, 4  ;;  %s798_s28 = sshll.u32 %s1414_s5, 4  ;;  %vm789_vm2 = vcmask 57344   ;;  %s797_s0 = int_to_ptr.vmem [resolvable:$true] %s796_s0  ;;  %s799_s28 = int_to_ptr.hbm [resolvable:$true] %s798_s28 }
  0x10   :  { %833 = vmatmul.msk.f32.gmra.mxu3 %vm247_vm0, %v47_v15  ;;  %v24_v19 = vld [vmem:[%s1410_s1 + $0x10] sm:$0xff]  ;;  %v25_v26 = vld [vmem:[%s1410_s1 + $0x18] sm:$0xff]  ;;  %v68_v31 = vld [vmem:[%s1411_s2 + $0x68] sm:$0xff] }
  0x11   :  { %v32_v20 = vld [vmem:[%s1410_s1 + $0x50] sm:$0xff]  ;;  %v33_v27 = vld [vmem:[%s1410_s1 + $0x58] sm:$0xff]  ;;  %v67_v32 = vld [vmem:[%s1411_s2 + $0x60] sm:$0xff] }
  0x12   :  { %v40_v21 = vld [vmem:[%s1410_s1 + $0x90] sm:$0xff]  ;;  %v41_v28 = vld [vmem:[%s1410_s1 + $0x98] sm:$0xff]  ;;  %v26_v33 = vld [vmem:[%s1410_s1 + $0x20] sm:$0xff] }
  0x13   :  { %v48_v22 = vld [vmem:[%s1410_s1 + $0xd0] sm:$0xff]  ;;  %v49_v29 = vld [vmem:[%s1410_s1 + $0xd8] sm:$0xff]  ;;  %v34_v34 = vld [vmem:[%s1410_s1 + $0x60] sm:$0xff] }
  0x14   :  { %129 = vperm.xlu2 %847, %v63_v16   ;;  %v65_v24 = vld [vmem:[%s1411_s2 + $0x50] sm:$0xff]  ;;  %v42_v35 = vld [vmem:[%s1410_s1 + $0xa0] sm:$0xff]  ;;  %v72_v37 = vld [vmem:[%s1411_s2 + $0x88] sm:$0xff] }
  0x15   :  { %124 = vperm.xlu1 %846, %v62_v17   ;;  %119 = vperm.xlu0 %845, %v61_v18   ;;  %v69_v30 = vld [vmem:[%s1411_s2 + $0x70] sm:$0xff]  ;;  %v50_v36 = vld [vmem:[%s1410_s1 + $0xe0] sm:$0xff]  ;;  %v70_v39 = vld [vmem:[%s1411_s2 + $0x78] sm:$0xff] }
  0x16   :  { %810 = vmatmul.msk.f32.gmra.mxu0 %vm247_vm0, %v24_v19  ;;  %818 = vmatmul.msk.f32.gmra.mxu1 %vm247_vm0, %v32_v20  ;;  %v71_v38 = vld [vmem:[%s1411_s2 + $0x80] sm:$0xff]  ;;  %v27_v40 = vld [vmem:[%s1410_s1 + $0x28] sm:$0xff]  ;;  %v74_v45 = vld [vmem:[%s1411_s2 + $0x98] sm:$0xff] }
  0x17   :  { %826 = vmatmul.msk.f32.gmra.mxu2 %vm247_vm0, %v40_v21  ;;  %v35_v41 = vld [vmem:[%s1410_s1 + $0x68] sm:$0xff]  ;;  %v75_v44 = vld [vmem:[%s1411_s2 + $0xa0] sm:$0xff]  ;;  %v73_v46 = vld [vmem:[%s1411_s2 + $0x90] sm:$0xff] }
  0x18   :  { %834 = vmatmul.msk.f32.gmra.mxu3 %vm247_vm0, %v48_v22  ;;  %v43_v42 = vld [vmem:[%s1410_s1 + $0xa8] sm:$0xff]  ;;  %v28_v47 = vld [vmem:[%s1410_s1 + $0x30] sm:$0xff]  ;;  %v78_v51 = vld [vmem:[%s1411_s2 + $0xb8] sm:$0xff] }
  0x19   :  { %v51_v43 = vld [vmem:[%s1410_s1 + $0xe8] sm:$0xff]  ;;  %v36_v48 = vld [vmem:[%s1410_s1 + $0x70] sm:$0xff]  ;;  %v29_v54 = vld [vmem:[%s1410_s1 + $0x38] sm:$0xff] }
  0x1a   :  { %v44_v49 = vld [vmem:[%s1410_s1 + $0xb0] sm:$0xff]  ;;  %v76_v53 = vld [vmem:[%s1411_s2 + $0xa8] sm:$0xff]  ;;  %v37_v55 = vld [vmem:[%s1410_s1 + $0x78] sm:$0xff] }
  0x1b   :  { %v52_v50 = vld [vmem:[%s1410_s1 + $0xf0] sm:$0xff]  ;;  %v45_v56 = vld [vmem:[%s1410_s1 + $0xb8] sm:$0xff]  ;;  %v80_v59 = vld [vmem:[%s1411_s2 + $0xc8] sm:$0xff] }
  0x1c   :  { %144 = vperm.xlu2 %847, %v66_v23   ;;  %v77_v52 = vld [vmem:[%s1411_s2 + $0xb0] sm:$0xff]  ;;  %v53_v57 = vld [vmem:[%s1410_s1 + $0xf8] sm:$0xff]  ;;  %v79_v60 = vld [vmem:[%s1411_s2 + $0xc0] sm:$0xff] }
  0x1d   :  { %139 = vperm.xlu1 %846, %v65_v24   ;;  %134 = vperm.xlu0 %845, %v64_v25   ;;  %v81_v58 = vld [vmem:[%s1411_s2 + $0xd0] sm:$0xff]  ;;  %v84_v61 = vld [vmem:[%s1411_s2 + $0xe8] sm:$0xff]  ;;  %v83_v62 = vld [vmem:[%s1411_s2 + $0xe0] sm:$0xff] }
  0x1e   :  { %811 = vmatmul.msk.f32.gmra.mxu0 %vm247_vm0, %v25_v26  ;;  %819 = vmatmul.msk.f32.gmra.mxu1 %vm247_vm0, %v33_v27  ;;  %v82_v63 = vld [vmem:[%s1411_s2 + $0xd8] sm:$0xff]  ;;  %v492_v0 = vld [vmem:[%s1412_s3] sm:$0xff]  ;;  %v85_v2 = vld [vmem:[%s1411_s2 + $0xf0] sm:$0xff] }
  0x1f   :  { %827 = vmatmul.msk.f32.gmra.mxu2 %vm247_vm0, %v41_v28  ;;  %v86_v1 = vld [vmem:[%s1411_s2 + $0xf8] sm:$0xff]  ;;  %v494_v4 = vld [vmem:[%s1412_s3 + $0x10] sm:$0xff]  ;;  %v493_v5 = vld [vmem:[%s1412_s3 + $0x8] sm:$0xff] }
  0x20   :  { %835 = vmatmul.msk.f32.gmra.mxu3 %vm247_vm0, %v49_v29  ;;  %v495_v3 = vld [vmem:[%s1412_s3 + $0x18] sm:$0xff]  ;;  %v498_v7 = vld [vmem:[%s1412_s3 + $0x30] sm:$0xff]  ;;  %v497_v8 = vld [vmem:[%s1412_s3 + $0x28] sm:$0xff] }
  0x21   :  { %v496_v9 = vld [vmem:[%s1412_s3 + $0x20] sm:$0xff]  ;;  %v501_v11 = vld [vmem:[%s1412_s3 + $0x48] sm:$0xff]  ;;  %v499_v13 = vld [vmem:[%s1412_s3 + $0x38] sm:$0xff] }
  0x22   :  { %v500_v12 = vld [vmem:[%s1412_s3 + $0x40] sm:$0xff]  ;;  %v503_v16 = vld [vmem:[%s1412_s3 + $0x58] sm:$0xff]  ;;  %v502_v17 = vld [vmem:[%s1412_s3 + $0x50] sm:$0xff] }
  0x23   :  { %v504_v15 = vld [vmem:[%s1412_s3 + $0x60] sm:$0xff]  ;;  %v507_v21 = vld [vmem:[%s1412_s3 + $0x78] sm:$0xff]  ;;  %v506_v22 = vld [vmem:[%s1412_s3 + $0x70] sm:$0xff] }
  0x24   :  { %159 = vperm.xlu2 %847, %v69_v30   ;;  %v505_v23 = vld [vmem:[%s1412_s3 + $0x68] sm:$0xff]  ;;  %v510_v27 = vld [vmem:[%s1412_s3 + $0x90] sm:$0xff]  ;;  %v508_v29 = vld [vmem:[%s1412_s3 + $0x80] sm:$0xff] }
  0x25   :  { %154 = vperm.xlu1 %846, %v68_v31   ;;  %149 = vperm.xlu0 %845, %v67_v32   ;;  %v509_v28 = vld [vmem:[%s1412_s3 + $0x88] sm:$0xff] }
  0x26   :  { %812 = vmatmul.msk.f32.gmra.mxu0 %vm247_vm0, %v26_v33  ;;  %820 = vmatmul.msk.f32.gmra.mxu1 %vm247_vm0, %v34_v34  ;;  %v513_v33 = vld [vmem:[%s1412_s3 + $0xa8] sm:$0xff]  ;;  %v512_v34 = vld [vmem:[%s1412_s3 + $0xa0] sm:$0xff] }
  0x27   :  { %828 = vmatmul.msk.f32.gmra.mxu2 %vm247_vm0, %v42_v35  ;;  %v511_v35 = vld [vmem:[%s1412_s3 + $0x98] sm:$0xff] }
  0x28   :  { %836 = vmatmul.msk.f32.gmra.mxu3 %vm247_vm0, %v50_v36 }
  0x2c   :  { %174 = vperm.xlu2 %847, %v72_v37  }
  0x2d   :  { %169 = vperm.xlu1 %846, %v71_v38   ;;  %164 = vperm.xlu0 %845, %v70_v39  }
  0x2e   :  { %813 = vmatmul.msk.f32.gmra.mxu0 %vm247_vm0, %v27_v40  ;;  %821 = vmatmul.msk.f32.gmra.mxu1 %vm247_vm0, %v35_v41  ;;  %v516_v40 = vld [vmem:[%s1412_s3 + $0xc0] sm:$0xff]  ;;  %v515_v41 = vld [vmem:[%s1412_s3 + $0xb8] sm:$0xff] }
  0x2f   :  { %829 = vmatmul.msk.f32.gmra.mxu2 %vm247_vm0, %v43_v42  ;;  %v514_v42 = vld [vmem:[%s1412_s3 + $0xb0] sm:$0xff] }
  0x30   :  { %837 = vmatmul.msk.f32.gmra.mxu3 %vm247_vm0, %v51_v43 }
  0x34   :  { %189 = vperm.xlu2 %847, %v75_v44  }
  0x35   :  { %184 = vperm.xlu1 %846, %v74_v45   ;;  %179 = vperm.xlu0 %845, %v73_v46   ;;  %v519_v46 = vld [vmem:[%s1412_s3 + $0xd8] sm:$0xff] }
  0x36   :  { %814 = vmatmul.msk.f32.gmra.mxu0 %vm247_vm0, %v28_v47  ;;  %822 = vmatmul.msk.f32.gmra.mxu1 %vm247_vm0, %v36_v48  ;;  %v518_v48 = vld [vmem:[%s1412_s3 + $0xd0] sm:$0xff] }
  0x37   :  { %830 = vmatmul.msk.f32.gmra.mxu2 %vm247_vm0, %v44_v49  ;;  %v517_v49 = vld [vmem:[%s1412_s3 + $0xc8] sm:$0xff] }
  0x38   :  { %838 = vmatmul.msk.f32.gmra.mxu3 %vm247_vm0, %v52_v50 }
  0x3c   :  { %204 = vperm.xlu2 %847, %v78_v51  }
  0x3d   :  { %199 = vperm.xlu1 %846, %v77_v52   ;;  %194 = vperm.xlu0 %845, %v76_v53   ;;  %v522_v53 = vld [vmem:[%s1412_s3 + $0xf0] sm:$0xff] }
  0x3e   :  { %815 = vmatmul.msk.f32.gmra.mxu0 %vm247_vm0, %v29_v54  ;;  %823 = vmatmul.msk.f32.gmra.mxu1 %vm247_vm0, %v37_v55  ;;  %v521_v55 = vld [vmem:[%s1412_s3 + $0xe8] sm:$0xff] }
  0x3f   :  { %831 = vmatmul.msk.f32.gmra.mxu2 %vm247_vm0, %v45_v56  ;;  %v520_v56 = vld [vmem:[%s1412_s3 + $0xe0] sm:$0xff] }
  0x40   :  { %839 = vmatmul.msk.f32.gmra.mxu3 %vm247_vm0, %v53_v57 }
  0x44   :  { %219 = vperm.xlu2 %847, %v81_v58  }
  0x45   :  { %214 = vperm.xlu1 %846, %v80_v59   ;;  %209 = vperm.xlu0 %845, %v79_v60  }
  0x4c   :  { %234 = vperm.xlu2 %847, %v84_v61   ;;  %v523_v61 = vld [vmem:[%s1412_s3 + $0xf8] sm:$0xff] }
  0x4d   :  { %229 = vperm.xlu1 %846, %v83_v62   ;;  %224 = vperm.xlu0 %845, %v82_v63  }
  0x54   :  { %526 = vperm.xlu2 %847, %v492_v0  }
  0x55   :  { %244 = vperm.xlu1 %846, %v86_v1   ;;  %239 = vperm.xlu0 %845, %v85_v2  }
  0x5c   :  { %541 = vperm.xlu2 %847, %v495_v3  }
  0x5d   :  { %536 = vperm.xlu1 %846, %v494_v4   ;;  %531 = vperm.xlu0 %845, %v493_v5  }
  0x5e   :  { %v1149_v6 = vpop.permute.xlu2 %109 }
  0x64   :  { %556 = vperm.xlu2 %847, %v498_v7  }
  0x65   :  { %551 = vperm.xlu1 %846, %v497_v8   ;;  %546 = vperm.xlu0 %845, %v496_v9  }
  0x66   :  { %v1160_v10 = vpop.permute.xlu2 %114 }
  0x6c   :  { %571 = vperm.xlu2 %847, %v501_v11  }
  0x6d   :  { %566 = vperm.xlu1 %846, %v500_v12   ;;  %561 = vperm.xlu0 %845, %v499_v13  }
  0x6e   :  { %v1171_v14 = vpop.permute.xlu2 %129 }
  0x74   :  { %586 = vperm.xlu2 %847, %v504_v15  }
  0x75   :  { %581 = vperm.xlu1 %846, %v503_v16   ;;  %576 = vperm.xlu0 %845, %v502_v17  }
  0x76   :  { %v1182_v18 = vpop.permute.xlu2 %144 }
  0x77   :  { %v1184_v19 = vpop.permute.xlu1 %99  ;;  %v1186_v20 = vpop.permute.xlu0 %89 }
  0x7c   :  { %601 = vperm.xlu2 %847, %v507_v21  }
  0x7d   :  { %596 = vperm.xlu1 %846, %v506_v22   ;;  %591 = vperm.xlu0 %845, %v505_v23  }
  0x7e   :  { %v1197_v24 = vpop.permute.xlu2 %159 }
  0x7f   :  { %v1199_v25 = vpop.permute.xlu1 %104  ;;  %v1201_v26 = vpop.permute.xlu0 %94 }
  0x83   :  { %v364_v39 = vpop.f32.mrf.mxu0  ;;  %v1266_v54 = vpop.f32.mrf.mxu1 }
  0x84   :  { %616 = vperm.xlu2 %847, %v510_v27   ;;  %v365_v23 = vadd.f32 %v364_v39, %v1186_v20 }
  0x85   :  { %611 = vperm.xlu1 %846, %v509_v28   ;;  %606 = vperm.xlu0 %845, %v508_v29  }
  0x86   :  { %v1212_v30 = vpop.permute.xlu2 %174 }
  0x87   :  { %v1214_v31 = vpop.permute.xlu1 %124  ;;  %v1216_v32 = vpop.permute.xlu0 %119 }
  0x8a   :  { %v1295_v7 = vpop.f32.mrf.mxu2 }
  0x8b   :  { %v367_v47 = vpop.f32.mrf.mxu0  ;;  %v1283_v62 = vpop.f32.mrf.mxu1 }
  0x8c   :  { %631 = vperm.xlu2 %847, %v513_v33   ;;  %v368_v27 = vadd.f32 %v367_v47, %v1201_v26  ;;  %v460_v33 = vmax.f32 %v365_v23, 0.0  ;;  %v1318_v47 = vpop.f32.mrf.mxu3 }
  0x8d   :  { %626 = vperm.xlu1 %846, %v512_v34   ;;  %621 = vperm.xlu0 %845, %v511_v35  }
  0x8e   :  { %v1227_v36 = vpop.permute.xlu2 %189 }
  0x8f   :  { %v1229_v37 = vpop.permute.xlu1 %139  ;;  %v1231_v38 = vpop.permute.xlu0 %134 }
  0x92   :  { %v1303_v15 = vpop.f32.mrf.mxu2 }
  0x93   :  { %v370_v57 = vpop.f32.mrf.mxu0  ;;  %v1289_v3 = vpop.f32.mrf.mxu1 }
  0x94   :  { %646 = vperm.xlu2 %847, %v516_v40   ;;  %v371_v28 = vadd.f32 %v370_v57, %v1184_v19 }
  0x95   :  { %641 = vperm.xlu1 %846, %v515_v41   ;;  %636 = vperm.xlu0 %845, %v514_v42   ;;  %v461_v41 = vmax.f32 %v368_v27, 0.0 }
  0x96   :  { %v1242_v43 = vpop.permute.xlu2 %204  ;;  %v462_v42 = vmax.f32 %v371_v28, 0.0 }
  0x97   :  { %v1244_v44 = vpop.permute.xlu1 %154  ;;  %v1246_v45 = vpop.permute.xlu0 %149 }
  0x9a   :  { %v1314_v34 = vpop.f32.mrf.mxu2 }
  0x9b   :  { %v373_v63 = vpop.f32.mrf.mxu0  ;;  %v1301_v13 = vpop.f32.mrf.mxu1 }
  0x9c   :  { %661 = vperm.xlu2 %847, %v519_v46   ;;  %v374_v35 = vadd.f32 %v373_v63, %v1199_v25 }
  0x9d   :  { %656 = vperm.xlu1 %846, %v518_v48   ;;  %651 = vperm.xlu0 %845, %v517_v49  }
  0x9e   :  { %v1257_v50 = vpop.permute.xlu2 %219 }
  0x9f   :  { %v1259_v51 = vpop.permute.xlu1 %169  ;;  %v1261_v52 = vpop.permute.xlu0 %164 }
  0xa2   :  { %v1325_v28 = vpop.f32.mrf.mxu2 }
  0xa3   :  { %v376_v8 = vpop.f32.mrf.mxu0  ;;  %v1312_v29 = vpop.f32.mrf.mxu1 }
  0xa4   :  { %676 = vperm.xlu2 %847, %v522_v53   ;;  %v463_v53 = vmax.f32 %v374_v35, 0.0  ;;  %v377_v19 = vadd.f32 %v376_v8, %v1149_v6 }
  0xa5   :  { %671 = vperm.xlu1 %846, %v521_v55   ;;  %666 = vperm.xlu0 %845, %v520_v56  }
  0xa6   :  { %v1278_v60 = vpop.permute.xlu2 %234 }
  0xa7   :  { %v1274_v58 = vpop.permute.xlu1 %184  ;;  %v1276_v59 = vpop.permute.xlu0 %179 }
  0xab   :  { %v379_v16 = vpop.f32.mrf.mxu0  ;;  %v403_v63 = vpop.f32.mrf.mxu1 }
  0xac   :  { %v380_v55 = vadd.f32 %v379_v16, %v1160_v10 }
  0xad   :  { %681 = vperm.xlu0 %845, %v523_v61  }
  0xae   :  { %v527_v2 = vpop.permute.xlu2 %526  ;;  %v465_v6 = vmax.f32 %v380_v55, 0.0 }
  0xaf   :  { %v1285_v0 = vpop.permute.xlu1 %199  ;;  %v1287_v1 = vpop.permute.xlu0 %194  ;;  %v684_v46 = vmul.f32 %v527_v2, %v460_v33  ;;  %v464_v33 = vmax.f32 %v377_v19, 0.0 }
  0xb0   :  { %v1334_v19 = vpop.f32.mrf.mxu3 }
  0xb1   :  { %v717_v56 = vsel %vm716_vm1, %v684_v46, 0.0 }
  0xb3   :  { %v382_v40 = vpop.f32.mrf.mxu0 }
  0xb4   :  { %v383_v2 = vadd.f32 %v382_v40, %v1216_v32 }
  0xb6   :  { %v542_v9 = vpop.permute.xlu2 %541 }
  0xb7   :  { %v1291_v4 = vpop.permute.xlu1 %214  ;;  %v1293_v5 = vpop.permute.xlu0 %209  ;;  %v687_v25 = vmul.f32 %v542_v9, %v463_v53  ;;  %v466_v9 = vmax.f32 %v383_v2, 0.0 }
  0xb9   :  { %v722_v8 = vsel %vm716_vm1, %v687_v25, 0.0 }
  0xbb   :  { %v385_v35 = vpop.f32.mrf.mxu0 }
  0xbc   :  { %v386_v32 = vadd.f32 %v385_v35, %v1214_v31 }
  0xbe   :  { %v557_v17 = vpop.permute.xlu2 %556 }
  0xbf   :  { %v1297_v11 = vpop.permute.xlu1 %229  ;;  %v1299_v12 = vpop.permute.xlu0 %224  ;;  %v690_v40 = vmul.f32 %v557_v17, %v466_v9 }
  0xc6   :  { %v572_v20 = vpop.permute.xlu2 %571 }
  0xc7   :  { %v1305_v21 = vpop.permute.xlu1 %244  ;;  %v1307_v22 = vpop.permute.xlu0 %239 }
  0xcf   :  { %v537_v48 = vpop.permute.xlu1 %536  ;;  %v532_v49 = vpop.permute.xlu0 %531 }
  0xd0   :  { %v686_v39 = vmul.f32 %v537_v48, %v462_v42  ;;  %v685_v26 = vmul.f32 %v532_v49, %v461_v41  ;;  %v389_v48 = vadd.f32 %v1266_v54, %v1171_v14  ;;  %v587_v49 = vpop.permute.xlu2 %586  ;;  %v728_v14 = vsel %vm716_vm1, %v690_v40, 0.0 }
  0xd2   :  { %v718_v57 = vsel %vm716_vm1, %v685_v26, 0.0  ;;  %v720_v23 = vsel %vm716_vm1, %v686_v39, 0.0  ;;  %v392_v26 = vadd.f32 %v1283_v62, %v1231_v38  ;;  %v468_v25 = vmax.f32 %v389_v48, 0.0 }
  0xd3   :  { %v719_v61 = vadd.f32 %v718_v57, %v717_v56  ;;  %v406_v57 = vpop.f32.mrf.mxu1  ;;  %v395_v38 = vadd.f32 %v1289_v3, %v1229_v37  ;;  %v398_v62 = vadd.f32 %v1301_v13, %v1182_v18 }
  0xd4   :  { %v469_v2 = vmax.f32 %v392_v26, 0.0 }
  0xd5   :  { %v721_v27 = vadd.f32 %v720_v23, %v719_v61  ;;  %v467_v61 = vmax.f32 %v386_v32, 0.0  ;;  %v1338_v23 = vpop.f32.mrf.mxu2  ;;  %v471_v48 = vmax.f32 %v398_v62, 0.0 }
  0xd7   :  { %v552_v10 = vpop.permute.xlu1 %551  ;;  %v547_v16 = vpop.permute.xlu0 %546  ;;  %v723_v41 = vadd.f32 %v722_v8, %v721_v27 }
  0xd8   :  { %v689_v42 = vmul.f32 %v552_v10, %v465_v6  ;;  %v688_v46 = vmul.f32 %v547_v16, %v464_v33  ;;  %v693_v6 = vmul.f32 %v572_v20, %v469_v2  ;;  %v401_v10 = vadd.f32 %v1312_v29, %v1246_v45  ;;  %v602_v16 = vpop.permute.xlu2 %601 }
  0xd9   :  { %v407_v29 = vadd.f32 %v406_v57, %v1197_v24 }
  0xda   :  { %v724_v53 = vsel %vm716_vm1, %v688_v46, 0.0  ;;  %v726_v55 = vsel %vm716_vm1, %v689_v42, 0.0  ;;  %v470_v42 = vmax.f32 %v395_v38, 0.0  ;;  %v1348_v46 = vpop.f32.mrf.mxu3  ;;  %v734_v37 = vsel %vm716_vm1, %v693_v6, 0.0 }
  0xdb   :  { %v725_v39 = vadd.f32 %v724_v53, %v723_v41  ;;  %v472_v13 = vmax.f32 %v401_v10, 0.0  ;;  %v409_v53 = vpop.f32.mrf.mxu1  ;;  %v416_v38 = vadd.f32 %v1303_v15, %v1212_v30 }
  0xdd   :  { %v727_v56 = vadd.f32 %v726_v55, %v725_v39  ;;  %v404_v39 = vadd.f32 %v403_v63, %v1244_v44  ;;  %v427_v45 = vpop.f32.mrf.mxu2  ;;  %v696_v26 = vmul.f32 %v587_v49, %v472_v13 }
  0xdf   :  { %v567_v54 = vpop.permute.xlu1 %566  ;;  %v562_v31 = vpop.permute.xlu0 %561  ;;  %v729_v17 = vadd.f32 %v728_v14, %v727_v56 }
  0xe0   :  { %v692_v27 = vmul.f32 %v567_v54, %v468_v25  ;;  %v691_v33 = vmul.f32 %v562_v31, %v467_v61  ;;  %v410_v25 = vadd.f32 %v409_v53, %v1261_v52  ;;  %v473_v54 = vmax.f32 %v404_v39, 0.0  ;;  %v617_v2 = vpop.permute.xlu2 %616 }
  0xe1   :  { %v474_v31 = vmax.f32 %v407_v29, 0.0  ;;  %v413_v52 = vadd.f32 %v1295_v7, %v1259_v51  ;;  %v428_v53 = vadd.f32 %v427_v45, %v1287_v1 }
  0xe2   :  { %v730_v8 = vsel %vm716_vm1, %v691_v33, 0.0  ;;  %v732_v41 = vsel %vm716_vm1, %v692_v27, 0.0  ;;  %v1357_v63 = vpop.f32.mrf.mxu3  ;;  %v475_v24 = vmax.f32 %v410_v25, 0.0 }
  0xe3   :  { %v731_v35 = vadd.f32 %v730_v8, %v729_v17  ;;  %v740_v17 = vsel %vm716_vm1, %v696_v26, 0.0 }
  0xe4   :  { %v699_v62 = vmul.f32 %v602_v16, %v475_v24 }
  0xe5   :  { %v733_v9 = vadd.f32 %v732_v41, %v731_v35  ;;  %v419_v35 = vadd.f32 %v1314_v34, %v1276_v59  ;;  %v430_v10 = vpop.f32.mrf.mxu2  ;;  %v425_v59 = vadd.f32 %v1338_v23, %v1227_v36 }
  0xe7   :  { %v582_v3 = vpop.permute.xlu1 %581  ;;  %v577_v32 = vpop.permute.xlu0 %576  ;;  %v735_v18 = vadd.f32 %v734_v37, %v733_v9  ;;  %v746_v37 = vsel %vm716_vm1, %v699_v62, 0.0 }
  0xe8   :  { %v695_v20 = vmul.f32 %v582_v3, %v471_v48  ;;  %v694_v40 = vmul.f32 %v577_v32, %v470_v42  ;;  %v477_v42 = vmax.f32 %v416_v38, 0.0  ;;  %v476_v48 = vmax.f32 %v413_v52, 0.0  ;;  %v632_v51 = vpop.permute.xlu2 %631 }
  0xe9   :  { %v478_v32 = vmax.f32 %v419_v35, 0.0  ;;  %v443_v35 = vadd.f32 %v1348_v46, %v1257_v50 }
  0xea   :  { %v736_v55 = vsel %vm716_vm1, %v694_v40, 0.0  ;;  %v738_v61 = vsel %vm716_vm1, %v695_v20, 0.0  ;;  %v448_v34 = vpop.f32.mrf.mxu3 }
  0xeb   :  { %v737_v56 = vadd.f32 %v736_v55, %v735_v18  ;;  %v422_v18 = vadd.f32 %v1325_v28, %v1274_v58  ;;  %v702_v13 = vmul.f32 %v617_v2, %v478_v32  ;;  %v480_v55 = vmax.f32 %v425_v59, 0.0 }
  0xed   :  { %v739_v14 = vadd.f32 %v738_v61, %v737_v56  ;;  %v479_v26 = vmax.f32 %v422_v18, 0.0  ;;  %v433_v56 = vpop.f32.mrf.mxu2  ;;  %v752_v25 = vsel %vm716_vm1, %v702_v13, 0.0  ;;  %v449_v18 = vadd.f32 %v448_v34, %v1297_v11 }
  0xef   :  { %v597_v27 = vpop.permute.xlu1 %596  ;;  %v592_v33 = vpop.permute.xlu0 %591  ;;  %v741_v44 = vadd.f32 %v740_v17, %v739_v14  ;;  %v481_v14 = vmax.f32 %v428_v53, 0.0 }
  0xf0   :  { %v698_v49 = vmul.f32 %v597_v27, %v474_v31  ;;  %v697_v57 = vmul.f32 %v592_v33, %v473_v54  ;;  %v431_v54 = vadd.f32 %v430_v10, %v1285_v0  ;;  %v434_v31 = vadd.f32 %v433_v56, %v1242_v43  ;;  %v647_v1 = vpop.permute.xlu2 %646 }
  0xf1   :  { %v705_v17 = vmul.f32 %v632_v51, %v481_v14  ;;  %v437_v33 = vadd.f32 %v1318_v47, %v1293_v5  ;;  %v440_v10 = vadd.f32 %v1334_v19, %v1291_v4 }
  0xf2   :  { %v742_v6 = vsel %vm716_vm1, %v697_v57, 0.0  ;;  %v744_v41 = vsel %vm716_vm1, %v698_v49, 0.0  ;;  %v451_v27 = vpop.f32.mrf.mxu3  ;;  %v482_v49 = vmax.f32 %v431_v54, 0.0  ;;  %v483_v57 = vmax.f32 %v434_v31, 0.0 }
  0xf3   :  { %v743_v8 = vadd.f32 %v742_v6, %v741_v44  ;;  %v758_v38 = vsel %vm716_vm1, %v705_v17, 0.0  ;;  %v484_v43 = vmax.f32 %v437_v33, 0.0 }
  0xf5   :  { %v745_v9 = vadd.f32 %v744_v41, %v743_v8  ;;  %v708_v5 = vmul.f32 %v647_v1, %v484_v43 }
  0xf7   :  { %v612_v3 = vpop.permute.xlu1 %611  ;;  %v607_v30 = vpop.permute.xlu0 %606  ;;  %v747_v15 = vadd.f32 %v746_v37, %v745_v9  ;;  %v446_v9 = vadd.f32 %v1357_v63, %v1299_v12  ;;  %v764_v32 = vsel %vm716_vm1, %v708_v5, 0.0 }
  0xf8   :  { %v701_v7 = vmul.f32 %v612_v3, %v477_v42  ;;  %v700_v16 = vmul.f32 %v607_v30, %v476_v48  ;;  %v662_v48 = vpop.permute.xlu2 %661  ;;  %v486_v30 = vmax.f32 %v443_v35, 0.0 }
  0xf9   :  { %v487_v4 = vmax.f32 %v446_v9, 0.0 }
  0xfa   :  { %v748_v20 = vsel %vm716_vm1, %v700_v16, 0.0  ;;  %v750_v39 = vsel %vm716_vm1, %v701_v7, 0.0  ;;  %v454_v42 = vpop.f32.mrf.mxu3  ;;  %v452_v16 = vadd.f32 %v451_v27, %v1278_v60 }
  0xfb   :  { %v749_v40 = vadd.f32 %v748_v20, %v747_v15  ;;  %v485_v15 = vmax.f32 %v440_v10, 0.0  ;;  %v711_v12 = vmul.f32 %v662_v48, %v487_v4  ;;  %v455_v13 = vadd.f32 %v454_v42, %v1307_v22 }
  0xfc   :  { %v489_v53 = vmax.f32 %v452_v16, 0.0 }
  0xfd   :  { %v751_v29 = vadd.f32 %v750_v39, %v749_v40  ;;  %v488_v39 = vmax.f32 %v449_v18, 0.0 }
  0xff   :  { %v627_v61 = vpop.permute.xlu1 %626  ;;  %v622_v58 = vpop.permute.xlu0 %621  ;;  %v753_v28 = vadd.f32 %v752_v25, %v751_v29 }
 0x100   :  { %v704_v36 = vmul.f32 %v627_v61, %v480_v55  ;;  %v703_v23 = vmul.f32 %v622_v58, %v479_v26  ;;  %v770_v26 = vsel %vm716_vm1, %v711_v12, 0.0  ;;  %v677_v55 = vpop.permute.xlu2 %676  ;;  %v490_v61 = vmax.f32 %v455_v13, 0.0 }
 0x102   :  { %v754_v45 = vsel %vm716_vm1, %v703_v23, 0.0  ;;  %v756_v44 = vsel %vm716_vm1, %v704_v36, 0.0  ;;  %v457_v29 = vpop.f32.mrf.mxu3 }
 0x103   :  { %v755_v2 = vadd.f32 %v754_v45, %v753_v28  ;;  %v458_v58 = vadd.f32 %v457_v29, %v1305_v21  ;;  %v714_v28 = vmul.f32 %v677_v55, %v490_v61 }
 0x105   :  { %v757_v24 = vadd.f32 %v756_v44, %v755_v2  ;;  %v491_v54 = vmax.f32 %v458_v58, 0.0  ;;  %v776_v31 = vsel %vm716_vm1, %v714_v28, 0.0 }
 0x107   :  { %v642_v52 = vpop.permute.xlu1 %641  ;;  %v637_v0 = vpop.permute.xlu0 %636  ;;  %v759_v62 = vadd.f32 %v758_v38, %v757_v24 }
 0x108   :  { %v707_v6 = vmul.f32 %v642_v52, %v483_v57  ;;  %v706_v8 = vmul.f32 %v637_v0, %v482_v49  ;;  %v787_v57 = vstv %s1413_s4 }
 0x10a   :  { %v760_v47 = vsel %vm716_vm1, %v706_v8, 0.0  ;;  %v762_v37 = vsel %vm716_vm1, %v707_v6, 0.0 }
 0x10b   :  { %v761_v41 = vadd.f32 %v760_v47, %v759_v62 }
 0x10d   :  { %v763_v3 = vadd.f32 %v762_v37, %v761_v41 }
 0x10f   :  { %v657_v50 = vpop.permute.xlu1 %656  ;;  %v652_v46 = vpop.permute.xlu0 %651  ;;  %v765_v51 = vadd.f32 %v764_v32, %v763_v3 }
 0x110   :  { %v710_v19 = vmul.f32 %v657_v50, %v486_v30  ;;  %v709_v7 = vmul.f32 %v652_v46, %v485_v15 }
 0x112   :  { %v766_v63 = vsel %vm716_vm1, %v709_v7, 0.0  ;;  %v768_v20 = vsel %vm716_vm1, %v710_v19, 0.0 }
 0x113   :  { %v767_v59 = vadd.f32 %v766_v63, %v765_v51 }
 0x115   :  { %v769_v40 = vadd.f32 %v768_v20, %v767_v59 }
 0x117   :  { %v672_v56 = vpop.permute.xlu1 %671  ;;  %v667_v25 = vpop.permute.xlu0 %666  ;;  %v771_v60 = vadd.f32 %v770_v26, %v769_v40 }
 0x118   :  { %v713_v11 = vmul.f32 %v672_v56, %v489_v53  ;;  %v712_v34 = vmul.f32 %v667_v25, %v488_v39 }
 0x11a   :  { %v772_v22 = vsel %vm716_vm1, %v712_v34, 0.0  ;;  %v774_v36 = vsel %vm716_vm1, %v713_v11, 0.0 }
 0x11b   :  { %v773_v14 = vadd.f32 %v772_v22, %v771_v60 }
 0x11d   :  { %v775_v23 = vadd.f32 %v774_v36, %v773_v14 }
 0x11f   :  { %v682_v17 = vpop.permute.xlu0 %681  ;;  %v777_v1 = vadd.f32 %v776_v31, %v775_v23 }
 0x120   :  { %v715_v45 = vmul.f32 %v682_v17, %v491_v54 }
 0x122   :  { %v778_v2 = vsel %vm716_vm1, %v715_v45, 0.0 }
 0x123   :  { %v779_v27 = vadd.f32 %v778_v2, %v777_v1 }
 0x125   :  { %v780_v33 = vrot.slane %v779_v27, 4 }
 0x127   :  { %v781_v44 = vadd.f32 %v780_v33, %v779_v27 }
 0x129   :  { %v782_v24 = vrot.slane %v781_v44, 2 }
 0x12b   :  { %v783_v21 = vadd.f32 %v782_v24, %v781_v44 }
 0x12d   :  { %v784_v49 = vrot.slane %v783_v21, 1 }
 0x12f   :  { %v785_v38 = vadd.f32 %v784_v49, %v783_v21 }
 0x131   :  { %v788_v52 = vadd.f32 %v787_v57, %v785_v38 }
 0x133   :  { %790 = vst.msk [vmem:[#allocation3] sm:$0x1] %vm789_vm2, %v788_v52 }
 0x134   :  { %801 = dma.vmem_to_hbm [thread:$0]  %s797_s0, 16, %s799_s28, [#allocation4]  }
 0x135   :  { %872 = dma.done.wait [#allocation4], 16  }
 0x136   :  { %873 = vsyncadd [#allocation4], 4294967280 }
 0x137   :  { %806 = vsyncpa [#allocation4], 1 }

</bundles_post_ra>
